<compile_context>
chip_gen: v6e
topology: v6e:2x2x1
jax: 0.10.0
libtpu: 0.0.40
codegen_flags: <defaults>
</compile_context>

<pallas_src>
import math

import jax
import jax.numpy as jnp
from jax.experimental import pallas as pl
from jax.experimental.pallas import tpu as pltpu

_LANE = 128
_SUBLANE = 8


def _round_up(x, m):
    return (x + m - 1) // m * m


def _ffn_kernel(x_ref, w1_ref, b1_ref, w2_ref, b2_ref, o_ref, acc_ref):
    """One (row-tile i, hidden-tile k) grid step of  (GELU(x @ W1 + b1)) @ W2 + b2."""
    k = pl.program_id(1)

    @pl.when(k == 0)
    def _init():
        acc_ref[...] = jnp.zeros_like(acc_ref)

    # bf16 x bf16 -> f32 MXU matmul (operands kept in their native compute dtype).
    h = jnp.dot(x_ref[...], w1_ref[...], preferred_element_type=jnp.float32)
    h = h + b1_ref[...]  # bias slice, f32
    # Exact erf-based GELU in f32 (matches torch.nn.GELU default).
    h = 0.5 * h * (1.0 + jax.lax.erf(h * (1.0 / math.sqrt(2.0))))
    acc_ref[...] += jnp.dot(h.astype(w2_ref.dtype), w2_ref[...],
                            preferred_element_type=jnp.float32)

    @pl.when(k == pl.num_programs(1) - 1)
    def _finalize():
        o_ref[...] = (acc_ref[...] + b2_ref[...]).astype(o_ref.dtype)


def feed_forward(x, w1, b1, w2, b2, *, tile_m=256, tile_h=512,
                 compute_dtype=jnp.bfloat16):
    """x: (..., in_dim); w1: (in_dim, hidden); b1: (hidden,); w2: (hidden, out); b2: (out,).

    Weights are expected pre-transposed to (in, out) layout (PyTorch stores (out, in)).
    """
    orig_shape = x.shape
    in_dim = orig_shape[-1]
    hidden = w1.shape[1]
    out_dim = w2.shape[1]
    out_dtype = x.dtype

    x2 = x.reshape(-1, in_dim)
    M = x2.shape[0]

    # Row tile: as large as requested, but no larger than the (sublane-rounded) row count.
    tm = min(_round_up(tile_m, _SUBLANE), _round_up(M, _SUBLANE))

    # Feature dims padded to lane width so matmul operands / stores are lane-dense.
    # Zero padding is exact: zero x-cols x zero W1-rows add nothing, padded hidden units
    # hit zero W2-rows, padded output columns are sliced off at the end.
    in_p = _round_up(in_dim, _LANE)
    out_p = _round_up(out_dim, _LANE)
    th = min(_round_up(tile_h, _LANE), _round_up(hidden, _LANE))
    hid_p = _round_up(hidden, th)

    # bf16 MXU operands (cast once here); biases stay f32 and are added to the f32 acc.
    x2 = x2.astype(compute_dtype)
    w1c = w1.astype(compute_dtype)
    w2c = w2.astype(compute_dtype)
    b1_2d = b1.astype(jnp.float32).reshape(1, hidden)
    b2_2d = b2.astype(jnp.float32).reshape(1, out_dim)

    if in_p != in_dim:
        x2 = jnp.pad(x2, ((0, 0), (0, in_p - in_dim)))
        w1c = jnp.pad(w1c, ((0, in_p - in_dim), (0, 0)))
    if hid_p != hidden:
        w1c = jnp.pad(w1c, ((0, 0), (0, hid_p - hidden)))
        b1_2d = jnp.pad(b1_2d, ((0, 0), (0, hid_p - hidden)))
        w2c = jnp.pad(w2c, ((0, hid_p - hidden), (0, 0)))
    if out_p != out_dim:
        w2c = jnp.pad(w2c, ((0, 0), (0, out_p - out_dim)))
        b2_2d = jnp.pad(b2_2d, ((0, 0), (0, out_p - out_dim)))

    grid = (pl.cdiv(M, tm), hid_p // th)

    # Explicit scoped-VMEM budget sized from the actual tile footprint (double-buffered
    # inputs/outputs + f32 accumulator + f32 intermediate), clamped to be safe on v7x.
    csz = jnp.dtype(compute_dtype).itemsize
    osz = jnp.dtype(out_dtype).itemsize
    vmem_bytes = (
        2 * tm * in_p * csz            # x row tile
        + 2 * in_p * th * csz          # W1 column slice
        + 2 * th * out_p * csz         # W2 row slice
        + 2 * (th + out_p) * 4         # bias slices
        + 2 * tm * out_p * osz         # output tile
        + tm * out_p * 4               # f32 accumulator scratch
        + tm * th * 4                  # f32 intermediate h tile
    )
    vmem_limit = int(min(max(2 * vmem_bytes, 32 * 1024 * 1024), 48 * 1024 * 1024))

    out = pl.pallas_call(
        _ffn_kernel,
        out_shape=jax.ShapeDtypeStruct((M, out_p), out_dtype),
        grid_spec=pltpu.PrefetchScalarGridSpec(
            num_scalar_prefetch=0,
            grid=grid,
            in_specs=[
                pl.BlockSpec((tm, in_p), lambda i, k: (i, 0)),    # x row tile
                pl.BlockSpec((in_p, th), lambda i, k: (0, k)),    # W1 column slice
                pl.BlockSpec((1, th), lambda i, k: (0, k)),       # b1 slice (f32)
                pl.BlockSpec((th, out_p), lambda i, k: (k, 0)),   # W2 row slice
                pl.BlockSpec((1, out_p), lambda i, k: (0, 0)),    # b2 (f32)
            ],
            out_specs=pl.BlockSpec((tm, out_p), lambda i, k: (i, 0)),
            scratch_shapes=[pltpu.VMEM((tm, out_p), jnp.float32)],
        ),
        compiler_params=pltpu.CompilerParams(
            dimension_semantics=("parallel", "arbitrary"),
            vmem_limit_bytes=vmem_limit,
        ),
    )(x2, w1c, b1_2d, w2c, b2_2d)

    if out_p != out_dim:
        out = out[:, :out_dim]
    return out.reshape(*orig_shape[:-1], out_dim)


if __name__ == "__main__":
    # Shapes matching the T2T-stage FeedForward in the DiT module:
    # FeedForward(in_dim=attn_out_dim=64, hidden_dim=mlp_dim=64, out_dim=ff_out_dim=64).
    batch, seq, in_dim, hidden_dim = 2, 16, 64, 64
    out_dim = in_dim
    # TODO(synk): Dropout layers are p=0.0 / eval-mode identities, so no RNG masking is implemented.

    key = jax.random.PRNGKey(0)
    kx, k1, k2, k3, k4 = jax.random.split(key, 5)

    x = jax.random.normal(kx, (batch, seq, in_dim), dtype=jnp.float32)
    # Parameters stored pre-transposed as (in, out).
    w1 = jax.random.normal(k1, (in_dim, hidden_dim), dtype=jnp.float32) * (1.0 / math.sqrt(in_dim))
    b1 = jax.random.normal(k2, (hidden_dim,), dtype=jnp.float32) * 0.01
    w2 = jax.random.normal(k3, (hidden_dim, out_dim), dtype=jnp.float32) * (1.0 / math.sqrt(hidden_dim))
    b2 = jax.random.normal(k4, (out_dim,), dtype=jnp.float32) * 0.01

    y = feed_forward(x, w1, b1, w2, b2)
    jax.block_until_ready(y)
    assert y.shape == (batch, seq, out_dim)

    # Reference mirroring the kernel's precision path (bf16 MXU operands, f32 accumulation,
    # exact erf GELU in f32) so the comparison is tight.
    xb = x.astype(jnp.bfloat16).astype(jnp.float32).reshape(-1, in_dim)
    w1b = w1.astype(jnp.bfloat16).astype(jnp.float32)
    w2b = w2.astype(jnp.bfloat16).astype(jnp.float32)
    h_ref = jnp.dot(xb, w1b, precision=jax.lax.Precision.HIGHEST) + b1
    h_ref = jax.nn.gelu(h_ref, approximate=False)
    h_ref = h_ref.astype(jnp.bfloat16).astype(jnp.float32)
    y_ref = (jnp.dot(h_ref, w2b, precision=jax.lax.Precision.HIGHEST) + b2)
    y_ref = y_ref.reshape(batch, seq, out_dim)

    err = float(jnp.max(jnp.abs(y - y_ref)))
    assert err < 5e-3, f"mismatch vs reference: max abs err {err}"

    print("KERNEL_OK")
</pallas_src>

<mosaic_0001>
module attributes {stable_mosaic.version = 11 : i64} {
  func.func @_ffn_kernel(%arg0: i32, %arg1: i32, %arg2: memref<32x128xbf16, #tpu.memory_space<vmem>>, %arg3: memref<128x128xbf16, #tpu.memory_space<vmem>>, %arg4: memref<1x128xf32, #tpu.memory_space<vmem>>, %arg5: memref<128x128xbf16, #tpu.memory_space<vmem>>, %arg6: memref<1x128xf32, #tpu.memory_space<vmem>>, %arg7: memref<32x128xf32, #tpu.memory_space<vmem>>, %arg8: memref<32x128xf32, #tpu.memory_space<vmem>>) attributes {dimension_semantics = [#tpu.dimension_semantics<parallel>, #tpu.dimension_semantics<arbitrary>], iteration_bounds = array<i64: 1, 1>, scalar_prefetch = 0 : i64, scratch_operands = 1 : i64, tpu.core_type = #tpu.core_type<tc>, window_params = [{transform_indices = @transform_0, window_bounds = array<i64: 32, 128>}, {transform_indices = @transform_1, window_bounds = array<i64: 128, 128>}, {transform_indices = @transform_2, window_bounds = array<i64: 1, 128>}, {transform_indices = @transform_3, window_bounds = array<i64: 128, 128>}, {pipeline_mode = #tpu.pipeline_mode<synchronous>, transform_indices = @transform_4, window_bounds = array<i64: 1, 128>}, {transform_indices = @transform_5, window_bounds = array<i64: 32, 128>}]} {
    %c0_i32 = arith.constant 0 : i32
    %0 = arith.cmpi eq, %arg1, %c0_i32 : i32
    %1 = arith.extui %0 : i1 to i32
    %c0_i32_0 = arith.constant 0 : i32
    %2 = arith.cmpi ne, %1, %c0_i32_0 : i32
    scf.if %2 {
      %cst_18 = arith.constant 0.000000e+00 : f32
      %26 = vector.broadcast %cst_18 : f32 to vector<32x128xf32>
      %c0_19 = arith.constant 0 : index
      %c0_20 = arith.constant 0 : index
      %27 = vector.load %arg8[%c0_19, %c0_20] : memref<32x128xf32, #tpu.memory_space<vmem>>, vector<32x128xf32>
      tpu.vector_store %arg8[%c0_19, %c0_20], %26 {strides = array<i32>} : memref<32x128xf32, #tpu.memory_space<vmem>>, vector<32x128xf32>,
    } else {
    }
    %c0 = arith.constant 0 : index
    %c0_1 = arith.constant 0 : index
    %3 = vector.load %arg2[%c0, %c0_1] : memref<32x128xbf16, #tpu.memory_space<vmem>>, vector<32x128xbf16>
    %c0_2 = arith.constant 0 : index
    %c0_3 = arith.constant 0 : index
    %4 = vector.load %arg3[%c0_2, %c0_3] : memref<128x128xbf16, #tpu.memory_space<vmem>>, vector<128x128xbf16>
    %cst = arith.constant dense<0.000000e+00> : vector<32x128xf32>
    %5 = tpu.matmul %3, %4, %cst {dimension_numbers = #tpu.dot_dimension_numbers<[1], [0], [0], [1], [0, 0, 1, 1], [], []>} : vector<32x128xbf16>, vector<128x128xbf16>, vector<32x128xf32> -> vector<32x128xf32>
    %c0_4 = arith.constant 0 : index
    %c0_5 = arith.constant 0 : index
    %6 = vector.load %arg4[%c0_4, %c0_5] : memref<1x128xf32, #tpu.memory_space<vmem>>, vector<1x128xf32>
    %7 = vector.broadcast %6 : vector<1x128xf32> to vector<32x128xf32>
    %8 = arith.addf %5, %7 : vector<32x128xf32>
    %cst_6 = arith.constant 5.000000e-01 : f32
    %9 = vector.broadcast %cst_6 : f32 to vector<32x128xf32>
    %10 = arith.mulf %9, %8 : vector<32x128xf32>
    %cst_7 = arith.constant 0.707106769 : f32
    %11 = vector.broadcast %cst_7 : f32 to vector<32x128xf32>
    %12 = arith.mulf %8, %11 : vector<32x128xf32>
    %13 = math.erf %12 : vector<32x128xf32>
    %cst_8 = arith.constant 1.000000e+00 : f32
    %14 = vector.broadcast %cst_8 : f32 to vector<32x128xf32>
    %15 = arith.addf %14, %13 : vector<32x128xf32>
    %16 = arith.mulf %10, %15 : vector<32x128xf32>
    %c0_9 = arith.constant 0 : index
    %c0_10 = arith.constant 0 : index
    %17 = vector.load %arg8[%c0_9, %c0_10] : memref<32x128xf32, #tpu.memory_space<vmem>>, vector<32x128xf32>
    %18 = arith.truncf %16 : vector<32x128xf32> to vector<32x128xbf16>
    %c0_11 = arith.constant 0 : index
    %c0_12 = arith.constant 0 : index
    %19 = vector.load %arg5[%c0_11, %c0_12] : memref<128x128xbf16, #tpu.memory_space<vmem>>, vector<128x128xbf16>
    %cst_13 = arith.constant dense<0.000000e+00> : vector<32x128xf32>
    %20 = tpu.matmul %18, %19, %cst_13 {dimension_numbers = #tpu.dot_dimension_numbers<[1], [0], [0], [1], [0, 0, 1, 1], [], []>} : vector<32x128xbf16>, vector<128x128xbf16>, vector<32x128xf32> -> vector<32x128xf32>
    %21 = arith.addf %17, %20 : vector<32x128xf32>
    %c0_14 = arith.constant 0 : index
    %c0_15 = arith.constant 0 : index
    %22 = vector.load %arg8[%c0_14, %c0_15] : memref<32x128xf32, #tpu.memory_space<vmem>>, vector<32x128xf32>
    tpu.vector_store %arg8[%c0_14, %c0_15], %21 {strides = array<i32>} : memref<32x128xf32, #tpu.memory_space<vmem>>, vector<32x128xf32>,
    %c0_i32_16 = arith.constant 0 : i32
    %23 = arith.cmpi eq, %arg1, %c0_i32_16 : i32
    %24 = arith.extui %23 : i1 to i32
    %c0_i32_17 = arith.constant 0 : i32
    %25 = arith.cmpi ne, %24, %c0_i32_17 : i32
    scf.if %25 {
      %c0_18 = arith.constant 0 : index
      %c0_19 = arith.constant 0 : index
      %26 = vector.load %arg8[%c0_18, %c0_19] : memref<32x128xf32, #tpu.memory_space<vmem>>, vector<32x128xf32>
      %c0_20 = arith.constant 0 : index
      %c0_21 = arith.constant 0 : index
      %27 = vector.load %arg6[%c0_20, %c0_21] : memref<1x128xf32, #tpu.memory_space<vmem>>, vector<1x128xf32>
      %28 = vector.broadcast %27 : vector<1x128xf32> to vector<32x128xf32>
      %29 = arith.addf %26, %28 : vector<32x128xf32>
      %c0_22 = arith.constant 0 : index
      %c0_23 = arith.constant 0 : index
      %30 = vector.load %arg7[%c0_22, %c0_23] : memref<32x128xf32, #tpu.memory_space<vmem>>, vector<32x128xf32>
      tpu.vector_store %arg7[%c0_22, %c0_23], %29 {strides = array<i32>} : memref<32x128xf32, #tpu.memory_space<vmem>>, vector<32x128xf32>,
    } else {
    }
    return
  }
  func.func @transform_0(%arg0: i32, %arg1: i32) -> (i32, i32) {
    %c0_i32 = arith.constant 0 : i32
    %c0_i32_0 = arith.constant 0 : i32
    return %arg0, %c0_i32 : i32, i32
  }
  func.func @transform_1(%arg0: i32, %arg1: i32) -> (i32, i32) {
    %c0_i32 = arith.constant 0 : i32
    %c0_i32_0 = arith.constant 0 : i32
    return %c0_i32, %arg1 : i32, i32
  }
  func.func @transform_2(%arg0: i32, %arg1: i32) -> (i32, i32) {
    %c0_i32 = arith.constant 0 : i32
    %c0_i32_0 = arith.constant 0 : i32
    return %c0_i32, %arg1 : i32, i32
  }
  func.func @transform_3(%arg0: i32, %arg1: i32) -> (i32, i32) {
    %c0_i32 = arith.constant 0 : i32
    %c0_i32_0 = arith.constant 0 : i32
    return %arg1, %c0_i32 : i32, i32
  }
  func.func @transform_4(%arg0: i32, %arg1: i32) -> (i32, i32) {
    %c0_i32 = arith.constant 0 : i32
    %c0_i32_0 = arith.constant 0 : i32
    %c0_i32_1 = arith.constant 0 : i32
    return %c0_i32, %c0_i32_0 : i32, i32
  }
  func.func @transform_5(%arg0: i32, %arg1: i32) -> (i32, i32) {
    %c0_i32 = arith.constant 0 : i32
    %c0_i32_0 = arith.constant 0 : i32
    return %arg0, %c0_i32 : i32, i32
  }
}

</mosaic_0001>

<bundles_post_ra>
// kernel: tpu_custom_call.1
= control target key start
LH: loop header
LB: loop body
LE: loop exit
PB: predicated region body
PF: predicated region fallthrough
CT: control target
= control target key end

     0   :  { %10 = vsyncpa [#allocation4], 0  ;;  %s650_s0 = inlined_call_operand.hbm [shape: bf16[32,128], index: 0, kind: input, shape index: {}]   ;;  %s651_s1 = inlined_call_operand.hbm [shape: bf16[128,128], index: 1, kind: input, shape index: {}]   ;;  %s652_s2 = inlined_call_operand.vmem [shape: f32[1,128], index: 2, kind: input, shape index: {}]   ;;  %s653_s3 = inlined_call_operand.hbm [shape: bf16[128,128], index: 3, kind: input, shape index: {}]   ;;  %s654_s4 = inlined_call_operand.vmem [shape: f32[1,128], index: 4, kind: input, shape index: {}]   ;;  %s655_s5 = inlined_call_operand.hbm [shape: f32[32,128], index: 5, kind: output, shape index: {}]  }
   0x1   :  { %11 = vsyncpa [#allocation7], 0 }
   0x2   :  { %12 = vsyncpa [#allocation5], 0  ;;  %s594_s18 = smov [#allocation6]   ;;  %s595_s20 = smov [#allocation3]  }
   0x3   :  { %s30_s19 = sshll.u32 %s594_s18, 4  ;;  %s18_s21 = sshll.u32 %s595_s20, 4  ;;  %s31_s19 = int_to_ptr.vmem [resolvable:$true] %s30_s19  ;;  %s19_s21 = int_to_ptr.vmem [resolvable:$true] %s18_s21 }
   0x4   :  { %s516_s22 = scalar_lea.vmem %s31_s19, 1024  ;;  %p521_p1 = scmp.lt.s32.totalorder %s31_s19, %s31_s19 }
   0x5   :  { %p517_p0 = scmp.ne.s32.totalorder %s31_s19, %s516_s22  ;;  %p522_p2 = scmp.lt.s32.totalorder %s516_s22, %s516_s22 }
   0x7   :  { %p523_p3 = por %p522_p2, %p521_p1 }
   0x9   :  { %p524_p4 = pnand %p523_p3, %p517_p0 }
   0xb   :  { %527 = shalt.err (!%p524_p4)
}
   0xc   :  { %s596_s23 = smov 64   ;;  %s597_s24 = smov 4  }
   0xd   :  { %36 = dma.hbm_to_vmem [thread:$0]  %s651_s1, 1024, %s31_s19, [#allocation7], %s596_s23, %s596_s23, %s597_s24  }
   0xe   :  { %s536_s27 = scalar_lea.vmem %s19_s21, 256  ;;  %p541_p6 = scmp.lt.s32.totalorder %s19_s21, %s19_s21 }
   0xf   :  { %p537_p5 = scmp.ne.s32.totalorder %s19_s21, %s536_s27  ;;  %p542_p7 = scmp.lt.s32.totalorder %s536_s27, %s536_s27 }
  0x11   :  { %p543_p8 = por %p542_p7, %p541_p6 }
  0x13   :  { %p544_p9 = pnand %p543_p8, %p537_p5 }
  0x15   :  { %547 = shalt.err (!%p544_p9)
}
  0x16   :  { %24 = dma.hbm_to_vmem [thread:$0]  %s650_s0, 256, %s19_s21, [#allocation4], %s596_s23, %s596_s23, %s597_s24  }
  0x17   :  { %s598_s30 = smov [#allocation8]  }
  0x18   :  { %s44_s6 = sshll.u32 %s598_s30, 4  ;;  %s45_s6 = int_to_ptr.vmem [resolvable:$true] %s44_s6 }
  0x19   :  { %s556_s7 = scalar_lea.vmem %s45_s6, 1024  ;;  %p561_p11 = scmp.lt.s32.totalorder %s45_s6, %s45_s6 }
  0x1a   :  { %p557_p10 = scmp.ne.s32.totalorder %s45_s6, %s556_s7  ;;  %p562_p12 = scmp.lt.s32.totalorder %s556_s7, %s556_s7 }
  0x1c   :  { %p563_p13 = por %p562_p12, %p561_p11 }
  0x1e   :  { %p564_p0 = pnand %p563_p13, %p557_p10 }
  0x20   :  { %567 = shalt.err (!%p564_p0)
}
  0x21   :  { %50 = dma.hbm_to_vmem [thread:$0]  %s653_s3, 1024, %s45_s6, [#allocation7], %s596_s23, %s596_s23, %s597_s24  }
  0x22   :  { %588 = dma.done.wait [#allocation4], 256  }
  0x23   :  { %589 = vsyncadd [#allocation4], 4294967040 }
  0x24   :  { %590 = dma.done.wait [#allocation7], 2048  }
  0x25   :  { %591 = vsyncadd [#allocation7], 4294965248  ;;  %v482_v0 = vld [vmem:[#allocation6 + $0x38] sm:$0xff]   ;;  %v483_v1 = vld [vmem:[#allocation6 + $0x30] sm:$0xff]   ;;  %s599_s10 = smov [#allocation9]  }
  0x26   :  { %434 = vmatprep.subr.bf16.mxu0 %v482_v0  ;;  %v484_v2 = vld [vmem:[#allocation6 + $0x28] sm:$0xff]   ;;  %v485_v3 = vld [vmem:[#allocation6 + $0x20] sm:$0xff]   ;;  %v490_v4 = vld [vmem:[#allocation3] sm:$0xff]   ;;  %s381_s11 = sshll.u32 %s599_s10, 4  ;;  %s382_s11 = int_to_ptr.vmem [resolvable:$true] %s381_s11 }
  0x27   :  { %435 = vmatpush3.bf16.msra.mxu0 %v482_v0  ;;  %v486_v5 = vld [vmem:[#allocation6 + $0x18] sm:$0xff]   ;;  %450 = vmatprep.mubr.bf16.mxu0 %v490_v4  ;;  %v487_v6 = vld [vmem:[#allocation6 + $0x10] sm:$0xff]   ;;  %v488_v7 = vld [vmem:[#allocation6 + $0x8] sm:$0xff]   ;;  %s568_s12 = scalar_lea.vmem %s382_s11, 512  ;;  %p573_p2 = scmp.lt.s32.totalorder %s382_s11, %s382_s11 }
  0x28   :  { %436 = vmatprep.subr.bf16.mxu0 %v483_v1  ;;  %v489_v8 = vld [vmem:[#allocation6] sm:$0xff]   ;;  %v491_v9 = vld [vmem:[#allocation3 + $0x8] sm:$0xff]   ;;  %v493_v11 = vld [vmem:[#allocation8 + $0x30] sm:$0xff]   ;;  %p569_p1 = scmp.ne.s32.totalorder %s382_s11, %s568_s12  ;;  %p574_p3 = scmp.lt.s32.totalorder %s568_s12, %s568_s12 }
  0x29   :  { %v492_v10 = vld [vmem:[#allocation8 + $0x38] sm:$0xff]   ;;  %v494_v12 = vld [vmem:[#allocation8 + $0x28] sm:$0xff]   ;;  %v495_v13 = vld [vmem:[#allocation8 + $0x20] sm:$0xff]  }
  0x2a   :  { %454 = vmatprep.subr.bf16.mxu1 %v492_v10  ;;  %v496_v14 = vld [vmem:[#allocation8 + $0x18] sm:$0xff]   ;;  %v497_v15 = vld [vmem:[#allocation8 + $0x10] sm:$0xff]   ;;  %v498_v16 = vld [vmem:[#allocation8 + $0x8] sm:$0xff]   ;;  %p575_p4 = por %p574_p3, %p573_p2 }
  0x2b   :  { %437 = vmatpush3.bf16.msra.mxu0 %v483_v1  ;;  %455 = vmatpush3.bf16.msra.mxu1 %v492_v10  ;;  %v499_v17 = vld [vmem:[#allocation8] sm:$0xff]   ;;  %v394_v18 = vld [vmem:[%s652_s2] ss:$0 sm:$0xff] }
  0x2c   :  { %438 = vmatprep.subr.bf16.mxu0 %v484_v2  ;;  %456 = vmatprep.subr.bf16.mxu1 %v493_v11  ;;  %v413_v49 = vld [vmem:[%s654_s4] ss:$0 sm:$0xff]  ;;  %p576_p5 = pnand %p575_p4, %p569_p1 }
  0x2f   :  { %439 = vmatpush3.bf16.msra.mxu0 %v484_v2  ;;  %457 = vmatpush3.bf16.msra.mxu1 %v493_v11 }
  0x30   :  { %440 = vmatprep.subr.bf16.mxu0 %v485_v3  ;;  %458 = vmatprep.subr.bf16.mxu1 %v494_v12 }
  0x33   :  { %441 = vmatpush3.bf16.msra.mxu0 %v485_v3  ;;  %459 = vmatpush3.bf16.msra.mxu1 %v494_v12 }
  0x34   :  { %442 = vmatprep.subr.bf16.mxu0 %v486_v5  ;;  %460 = vmatprep.subr.bf16.mxu1 %v495_v13 }
  0x37   :  { %443 = vmatpush3.bf16.msra.mxu0 %v486_v5  ;;  %461 = vmatpush3.bf16.msra.mxu1 %v495_v13 }
  0x38   :  { %444 = vmatprep.subr.bf16.mxu0 %v487_v6  ;;  %462 = vmatprep.subr.bf16.mxu1 %v496_v14 }
  0x3b   :  { %445 = vmatpush3.bf16.msra.mxu0 %v487_v6  ;;  %463 = vmatpush3.bf16.msra.mxu1 %v496_v14 }
  0x3c   :  { %446 = vmatprep.subr.bf16.mxu0 %v488_v7  ;;  %464 = vmatprep.subr.bf16.mxu1 %v497_v15 }
  0x3f   :  { %447 = vmatpush3.bf16.msra.mxu0 %v488_v7  ;;  %465 = vmatpush3.bf16.msra.mxu1 %v497_v15 }
  0x40   :  { %448 = vmatprep.subr.bf16.mxu0 %v489_v8  ;;  %466 = vmatprep.subr.bf16.mxu1 %v498_v16 }
  0x43   :  { %449 = vmatpush3.bf16.msra.mxu0 %v489_v8  ;;  %467 = vmatpush3.bf16.msra.mxu1 %v498_v16 }
  0x44   :  { %468 = vmatprep.subr.bf16.mxu1 %v499_v17 }
  0x46   :  { %451 = vmatmul.mubr.bf16.vlgmr.msra.gmra.mxu0 %v491_v9 }
  0x47   :  { %469 = vmatpush3.bf16.msra.mxu1 %v499_v17 }
 0x106   :  { %v452_v19 = vpop.f32.mrf.mxu0 }
 0x107   :  { %v201_v20 = vadd.f32 %v452_v19, %v394_v18 }
 0x108   :  { %v192_v21 = vpop.f32.mrf.mxu0 }
 0x109   :  { %v193_v22 = vadd.f32 %v394_v18, %v192_v21  ;;  %v213_v23 = vmul.f32 0.70710677, %v201_v20  ;;  %v209_v42 = vmul.f32 0.5, %v201_v20 }
 0x10a   :  { %v453_v24 = vpop.f32.mrf.mxu0 }
 0x10b   :  { %v211_v25 = vmul.f32 0.70710677, %v193_v22  ;;  %v204_v26 = vadd.f32 %v453_v24, %v394_v18  ;;  %v207_v39 = vmul.f32 0.5, %v193_v22 }
 0x10c   :  { %v195_v27 = vpop.f32.mrf.mxu0 }
 0x10d   :  { %500 = verf.f32 %v211_v25  ;;  %v214_v28 = vmul.f32 0.70710677, %v204_v26  ;;  %v196_v29 = vadd.f32 %v394_v18, %v195_v27  ;;  %v210_v38 = vmul.f32 0.5, %v204_v26 }
 0x10e   :  { %502 = verf.f32 %v213_v23 }
 0x10f   :  { %504 = verf.f32 %v214_v28  ;;  %v212_v30 = vmul.f32 0.70710677, %v196_v29  ;;  %v208_v40 = vmul.f32 0.5, %v196_v29 }
 0x111   :  { %506 = verf.f32 %v212_v30 }
 0x11a   :  { %v501_v31 = vpop.eup %500 }
 0x11b   :  { %v503_v32 = vpop.eup %502  ;;  %v219_v35 = vadd.f32 1.0, %v501_v31 }
 0x11c   :  { %v505_v33 = vpop.eup %504  ;;  %v221_v37 = vadd.f32 1.0, %v503_v32 }
 0x11d   :  { %v222_v34 = vadd.f32 1.0, %v505_v33  ;;  %v223_v44 = vmul.f32 %v219_v35, %v207_v39 }
 0x11e   :  { %v507_v36 = vpop.eup %506  ;;  %v225_v46 = vmul.f32 %v221_v37, %v209_v42 }
 0x11f   :  { %v220_v41 = vadd.f32 1.0, %v507_v36  ;;  %v226_v43 = vmul.f32 %v222_v34, %v210_v38 }
 0x121   :  { %v224_v45 = vmul.f32 %v220_v41, %v208_v40  ;;  %v232_v48 = vpack.c.bf16 %v226_v43, %v225_v46 }
 0x123   :  { %v231_v47 = vpack.c.bf16 %v224_v45, %v223_v44 }
 0x125   :  { %470 = vmatprep.mubr.bf16.mxu1 %v231_v47 }
 0x126   :  { %471 = vmatmul.mubr.bf16.vlgmr.msra.gmra.mxu1 %v232_v48 }
 0x1e6   :  { %v472_v50 = vpop.f32.mrf.mxu1 }
 0x1e7   :  { %v370_v51 = vadd.f32 %v472_v50, %v413_v49 }
 0x1e8   :  { %v331_v52 = vpop.f32.mrf.mxu1 }
 0x1e9   :  { %374 = vst [vmem:[#allocation9 + $0x10] sm:$0xff] %v370_v51  ;;  %v368_v53 = vadd.f32 %v413_v49, %v331_v52 }
 0x1ea   :  { %v473_v54 = vpop.f32.mrf.mxu1 }
 0x1eb   :  { %372 = vst [vmem:[#allocation9] sm:$0xff] %v368_v53  ;;  %v371_v55 = vadd.f32 %v473_v54, %v413_v49 }
 0x1ec   :  { %v334_v56 = vpop.f32.mrf.mxu1 }
 0x1ed   :  { %375 = vst [vmem:[#allocation9 + $0x18] sm:$0xff] %v371_v55  ;;  %v369_v57 = vadd.f32 %v413_v49, %v334_v56 }
 0x1ef   :  { %373 = vst [vmem:[#allocation9 + $0x8] sm:$0xff] %v369_v57 }
 0x1f0   :  { %579 = shalt.err (!%p576_p5)
}
 0x1f1   :  { %s600_s4 = smov 128   ;;  %s601_s13 = smov 8  }
 0x1f2   :  { %387 = dma.vmem_to_hbm [thread:$0]  %s382_s11, 512, %s655_s5, [#allocation5], %s600_s4, %s600_s4, %s601_s13  }
 0x1f3   :  { %592 = dma.done.wait [#allocation5], 512  }
 0x1f4   :  { %593 = vsyncadd [#allocation5], 4294966784 }
 0x1f5   :  { %391 = vsyncpa [#allocation4], 1 }
 0x1f6   :  { %392 = vsyncpa [#allocation7], 1 }
 0x1f7   :  { %393 = vsyncpa [#allocation5], 1 }

</bundles_post_ra>
